<compile_context>
chip_gen: v7x
topology: tpu7x:2x2x1
jax: 0.10.0
libtpu: 0.0.40
codegen_flags: <defaults>
</compile_context>

<pallas_src>
import jax
import jax.numpy as jnp
from jax.experimental import pallas as pl
from jax.experimental.pallas import tpu as pltpu


def _round_up(n: int, m: int) -> int:
    return (n + m - 1) // m * m


def xor_mlp_kernel(p_ref, x_ref, o_ref):
    # p_ref : SMEM f32[17], pre-folded:
    #   p[j]    = 0.5  * W1[j, 0]
    #   p[4+j]  = 0.5  * W1[j, 1]
    #   p[8+j]  = 0.5  * b1[j]
    #   p[12+j] = 0.25 * W2[0, j]
    #   p[16]   = 0.5  * b2[0] + 0.25 * sum_j W2[0, j]
    # x_ref : VMEM f32[2, R, 128]   (feature, batch-row, batch-lane)
    # o_ref : VMEM f32[R, 128]
    x0 = x_ref[0]                               # [R, 128]
    x1 = x_ref[1]                               # [R, 128]

    # y accumulates 0.5 * (W2 @ sigmoid(W1 x + b1) + b2)  (scales pre-folded).
    y = jnp.zeros_like(x0) + p_ref[16]
    for j in range(4):                          # unrolled hidden units: VPU FMAs
        pre = p_ref[j] * x0 + p_ref[4 + j] * x1 + p_ref[8 + j]   # = 0.5 * z1_j
        y = y + p_ref[12 + j] * jnp.tanh(pre)   # tanh on the EUP

    # sigmoid(z2) = 0.5 * tanh(0.5 * z2) + 0.5,  with y == 0.5 * z2
    o_ref[...] = 0.5 * jnp.tanh(y) + 0.5


def xor_mlp(x, w1, b1, w2, b2, *, max_rows_per_step=2048):
    """Forward of XORModel. PyTorch param shapes: w1 [4,2], b1 [4], w2 [1,4], b2 [1]."""
    B = x.shape[0]

    # Balanced, sublane-aligned tiling: rows of 128 lanes, R rows per grid step.
    nb = _round_up(pl.cdiv(B, 128), 8)          # batch rows (multiple of 8)
    nsteps = pl.cdiv(nb, max_rows_per_step)     # >= 2 steps for large B (megacore)
    rows = _round_up(pl.cdiv(nb, nsteps), 8)    # rows per step, sublane-aligned
    nb_pad = nsteps * rows
    bp = nb_pad * 128

    # Feature-major, zero-padded, dense (2, nb_pad, 128) layout.
    xt = jnp.zeros((2, bp), jnp.float32).at[:, :B].set(x.astype(jnp.float32).T)
    xt = xt.reshape(2, nb_pad, 128)

    # Pre-folded parameter vector (tanh-form sigmoid scalings baked in).
    w1h = 0.5 * w1.astype(jnp.float32)          # [4, 2]
    b1h = 0.5 * b1.astype(jnp.float32)          # [4]
    w2q = 0.25 * w2.astype(jnp.float32)         # [1, 4]
    b2f = 0.5 * b2.astype(jnp.float32) + jnp.sum(w2q)   # [1]
    params = jnp.concatenate([
        w1h[:, 0],            # p[0:4]
        w1h[:, 1],            # p[4:8]
        b1h,                  # p[8:12]
        w2q.reshape(-1),      # p[12:16]
        b2f.reshape(-1),      # p[16]
    ])

    grid_spec = pltpu.PrefetchScalarGridSpec(
        num_scalar_prefetch=1,
        grid=(nsteps,),
        in_specs=[pl.BlockSpec((2, rows, 128), lambda i, p: (0, i, 0))],
        out_specs=pl.BlockSpec((rows, 128), lambda i, p: (i, 0)),
    )
    out = pl.pallas_call(
        xor_mlp_kernel,
        out_shape=jax.ShapeDtypeStruct((nb_pad, 128), jnp.float32),
        grid_spec=grid_spec,
        compiler_params=pltpu.CompilerParams(dimension_semantics=("parallel",)),
    )(params, xt)

    # Padded lanes hold sigmoid-of-bias garbage; slice them off. Size-1 output
    # feature dim is restored with a reshape (no transpose).
    return out.reshape(bp)[:B].reshape(B, 1)


def reference(x, w1, b1, w2, b2):
    h = jax.nn.sigmoid(x @ w1.T + b1)
    return jax.nn.sigmoid(h @ w2.T + b2)


if __name__ == "__main__":
    key = jax.random.PRNGKey(0)
    kx, k1, k2, k3, k4 = jax.random.split(key, 5)

    # Deterministic init matching nn.Linear parameter shapes ([out, in] / [out]).
    w1 = jax.random.normal(k1, (4, 2), jnp.float32) * 0.5   # fc1.weight
    b1 = jax.random.normal(k2, (4,), jnp.float32) * 0.1     # fc1.bias
    w2 = jax.random.normal(k3, (1, 4), jnp.float32) * 0.5   # fc2.weight
    b2 = jax.random.normal(k4, (1,), jnp.float32) * 0.1     # fc2.bias

    # Small XOR-style batch of 0/1 input pairs.
    B = 8
    x = jax.random.bernoulli(kx, 0.5, (B, 2)).astype(jnp.float32)

    out = xor_mlp(x, w1, b1, w2, b2)
    jax.block_until_ready(out)
    ref = reference(x, w1, b1, w2, b2)
    assert out.shape == (B, 1)
    assert jnp.allclose(out, ref, atol=1e-5, rtol=0.0), (out, ref)

    # Second check: non-128-aligned batch exercises the padding/slicing path.
    B2 = 300
    x2 = jax.random.normal(kx, (B2, 2), jnp.float32)
    out2 = xor_mlp(x2, w1, b1, w2, b2)
    jax.block_until_ready(out2)
    ref2 = reference(x2, w1, b1, w2, b2)
    assert out2.shape == (B2, 1)
    assert jnp.allclose(out2, ref2, atol=1e-5, rtol=0.0)

    print("KERNEL_OK")
</pallas_src>

<mosaic_0001>
module attributes {stable_mosaic.version = 11 : i64} {
  func.func @xor_mlp_kernel(%arg0: i32, %arg1: memref<17xf32, #tpu.memory_space<smem>>, %arg2: memref<2x8x128xf32, #tpu.memory_space<vmem>>, %arg3: memref<8x128xf32, #tpu.memory_space<vmem>>) attributes {dimension_semantics = [#tpu.dimension_semantics<parallel>], iteration_bounds = array<i64: 1>, scalar_prefetch = 1 : i64, scratch_operands = 0 : i64, tpu.core_type = #tpu.core_type<tc>, window_params = [{transform_indices = @transform_0, window_bounds = array<i64: 2, 8, 128>}, {transform_indices = @transform_1, window_bounds = array<i64: 8, 128>}]} {
    %c0 = arith.constant 0 : index
    %c0_0 = arith.constant 0 : index
    %c0_1 = arith.constant 0 : index
    %0 = vector.load %arg2[%c0, %c0_0, %c0_1] : memref<2x8x128xf32, #tpu.memory_space<vmem>>, vector<1x8x128xf32>
    %1 = vector.shape_cast %0 : vector<1x8x128xf32> to vector<8x128xf32>
    %c1 = arith.constant 1 : index
    %c0_2 = arith.constant 0 : index
    %c0_3 = arith.constant 0 : index
    %2 = vector.load %arg2[%c1, %c0_2, %c0_3] : memref<2x8x128xf32, #tpu.memory_space<vmem>>, vector<1x8x128xf32>
    %3 = vector.shape_cast %2 : vector<1x8x128xf32> to vector<8x128xf32>
    %cst = arith.constant 0.000000e+00 : f32
    %4 = vector.broadcast %cst : f32 to vector<8x128xf32>
    %c16 = arith.constant 16 : index
    %5 = memref.load %arg1[%c16] : memref<17xf32, #tpu.memory_space<smem>>
    %6 = vector.broadcast %5 : f32 to vector<8x128xf32>
    %7 = arith.addf %4, %6 : vector<8x128xf32>
    %c0_4 = arith.constant 0 : index
    %8 = memref.load %arg1[%c0_4] : memref<17xf32, #tpu.memory_space<smem>>
    %9 = vector.broadcast %8 : f32 to vector<8x128xf32>
    %10 = arith.mulf %9, %1 : vector<8x128xf32>
    %c4 = arith.constant 4 : index
    %11 = memref.load %arg1[%c4] : memref<17xf32, #tpu.memory_space<smem>>
    %12 = vector.broadcast %11 : f32 to vector<8x128xf32>
    %13 = arith.mulf %12, %3 : vector<8x128xf32>
    %14 = arith.addf %10, %13 : vector<8x128xf32>
    %c8 = arith.constant 8 : index
    %15 = memref.load %arg1[%c8] : memref<17xf32, #tpu.memory_space<smem>>
    %16 = vector.broadcast %15 : f32 to vector<8x128xf32>
    %17 = arith.addf %14, %16 : vector<8x128xf32>
    %c12 = arith.constant 12 : index
    %18 = memref.load %arg1[%c12] : memref<17xf32, #tpu.memory_space<smem>>
    %19 = math.tanh %17 : vector<8x128xf32>
    %20 = vector.broadcast %18 : f32 to vector<8x128xf32>
    %21 = arith.mulf %20, %19 : vector<8x128xf32>
    %22 = arith.addf %7, %21 : vector<8x128xf32>
    %c1_5 = arith.constant 1 : index
    %23 = memref.load %arg1[%c1_5] : memref<17xf32, #tpu.memory_space<smem>>
    %24 = vector.broadcast %23 : f32 to vector<8x128xf32>
    %25 = arith.mulf %24, %1 : vector<8x128xf32>
    %c5 = arith.constant 5 : index
    %26 = memref.load %arg1[%c5] : memref<17xf32, #tpu.memory_space<smem>>
    %27 = vector.broadcast %26 : f32 to vector<8x128xf32>
    %28 = arith.mulf %27, %3 : vector<8x128xf32>
    %29 = arith.addf %25, %28 : vector<8x128xf32>
    %c9 = arith.constant 9 : index
    %30 = memref.load %arg1[%c9] : memref<17xf32, #tpu.memory_space<smem>>
    %31 = vector.broadcast %30 : f32 to vector<8x128xf32>
    %32 = arith.addf %29, %31 : vector<8x128xf32>
    %c13 = arith.constant 13 : index
    %33 = memref.load %arg1[%c13] : memref<17xf32, #tpu.memory_space<smem>>
    %34 = math.tanh %32 : vector<8x128xf32>
    %35 = vector.broadcast %33 : f32 to vector<8x128xf32>
    %36 = arith.mulf %35, %34 : vector<8x128xf32>
    %37 = arith.addf %22, %36 : vector<8x128xf32>
    %c2 = arith.constant 2 : index
    %38 = memref.load %arg1[%c2] : memref<17xf32, #tpu.memory_space<smem>>
    %39 = vector.broadcast %38 : f32 to vector<8x128xf32>
    %40 = arith.mulf %39, %1 : vector<8x128xf32>
    %c6 = arith.constant 6 : index
    %41 = memref.load %arg1[%c6] : memref<17xf32, #tpu.memory_space<smem>>
    %42 = vector.broadcast %41 : f32 to vector<8x128xf32>
    %43 = arith.mulf %42, %3 : vector<8x128xf32>
    %44 = arith.addf %40, %43 : vector<8x128xf32>
    %c10 = arith.constant 10 : index
    %45 = memref.load %arg1[%c10] : memref<17xf32, #tpu.memory_space<smem>>
    %46 = vector.broadcast %45 : f32 to vector<8x128xf32>
    %47 = arith.addf %44, %46 : vector<8x128xf32>
    %c14 = arith.constant 14 : index
    %48 = memref.load %arg1[%c14] : memref<17xf32, #tpu.memory_space<smem>>
    %49 = math.tanh %47 : vector<8x128xf32>
    %50 = vector.broadcast %48 : f32 to vector<8x128xf32>
    %51 = arith.mulf %50, %49 : vector<8x128xf32>
    %52 = arith.addf %37, %51 : vector<8x128xf32>
    %c3 = arith.constant 3 : index
    %53 = memref.load %arg1[%c3] : memref<17xf32, #tpu.memory_space<smem>>
    %54 = vector.broadcast %53 : f32 to vector<8x128xf32>
    %55 = arith.mulf %54, %1 : vector<8x128xf32>
    %c7 = arith.constant 7 : index
    %56 = memref.load %arg1[%c7] : memref<17xf32, #tpu.memory_space<smem>>
    %57 = vector.broadcast %56 : f32 to vector<8x128xf32>
    %58 = arith.mulf %57, %3 : vector<8x128xf32>
    %59 = arith.addf %55, %58 : vector<8x128xf32>
    %c11 = arith.constant 11 : index
    %60 = memref.load %arg1[%c11] : memref<17xf32, #tpu.memory_space<smem>>
    %61 = vector.broadcast %60 : f32 to vector<8x128xf32>
    %62 = arith.addf %59, %61 : vector<8x128xf32>
    %c15 = arith.constant 15 : index
    %63 = memref.load %arg1[%c15] : memref<17xf32, #tpu.memory_space<smem>>
    %64 = math.tanh %62 : vector<8x128xf32>
    %65 = vector.broadcast %63 : f32 to vector<8x128xf32>
    %66 = arith.mulf %65, %64 : vector<8x128xf32>
    %67 = arith.addf %52, %66 : vector<8x128xf32>
    %68 = math.tanh %67 : vector<8x128xf32>
    %cst_6 = arith.constant 5.000000e-01 : f32
    %69 = vector.broadcast %cst_6 : f32 to vector<8x128xf32>
    %70 = arith.mulf %69, %68 : vector<8x128xf32>
    %cst_7 = arith.constant 5.000000e-01 : f32
    %71 = vector.broadcast %cst_7 : f32 to vector<8x128xf32>
    %72 = arith.addf %70, %71 : vector<8x128xf32>
    %c0_8 = arith.constant 0 : index
    %c0_9 = arith.constant 0 : index
    %73 = vector.load %arg3[%c0_8, %c0_9] : memref<8x128xf32, #tpu.memory_space<vmem>>, vector<8x128xf32>
    tpu.vector_store %arg3[%c0_8, %c0_9], %72 {strides = array<i32>} : memref<8x128xf32, #tpu.memory_space<vmem>>, vector<8x128xf32>,
    return
  }
  func.func @transform_0(%arg0: i32, %arg1: memref<17xf32, #tpu.memory_space<smem>>) -> (i32, i32, i32) {
    %c0_i32 = arith.constant 0 : i32
    %c0_i32_0 = arith.constant 0 : i32
    %c0_i32_1 = arith.constant 0 : i32
    return %c0_i32, %arg0, %c0_i32_0 : i32, i32, i32
  }
  func.func @transform_1(%arg0: i32, %arg1: memref<17xf32, #tpu.memory_space<smem>>) -> (i32, i32) {
    %c0_i32 = arith.constant 0 : i32
    %c0_i32_0 = arith.constant 0 : i32
    return %arg0, %c0_i32 : i32, i32
  }
}

</mosaic_0001>

<bundles_post_ra>
// kernel: tpu_custom_call.1
= control target key start
LH: loop header
LB: loop body
LE: loop exit
PB: predicated region body
PF: predicated region fallthrough
CT: control target
= control target key end

     0   :  { %s266_s0 = inlined_call_operand.hbm [shape: f32[17], index: 0, kind: input, shape index: {}]   ;;  %s267_s1 = inlined_call_operand.hbm [shape: f32[2,8,128], index: 1, kind: input, shape index: {}]   ;;  %s268_s2 = inlined_call_operand.hbm [shape: f32[8,128], index: 2, kind: output, shape index: {}]  }
   0x1   :  { %s144_s11 = scalar_lea.hbm %s266_s0, 16 }
   0x2   :  { %p145_p0 = scmp.ne.s32.totalorder %s266_s0, %s144_s11  ;;  %p148_p1 = scmp.lt.u32.totalorder %s144_s11, %s266_s0 }
   0x4   :  { %p150_p2 = pnand %p148_p1, %p145_p0 }
   0x6   :  { %153 = shalt.err (!%p150_p2)  }
   0x7   :  { %s204_s16 = smov [#allocation3]  }
   0x8   :  { %8 = dma.hbm_to_smem %s266_s0, 16, %s204_s16, [#allocation2] }
   0x9   :  { %198 = dma.done.wait [#allocation2], 16 }
   0xa   :  { %199 = vsyncadd [#allocation2], 4294967280 }
   0xb   :  { %10 = sfence }
   0xc   :  { %11 = vsyncpa [#allocation5], 0 }
   0xd   :  { %12 = vsyncpa [#allocation6], 0  ;;  %s205_s19 = smov [#allocation4]   ;;  %s154_s23 = scalar_lea.hbm %s267_s1, 256 }
   0xe   :  { %s18_s20 = sshll.u32 %s205_s19, 4  ;;  %p155_p3 = scmp.ne.s32.totalorder %s267_s1, %s154_s23  ;;  %s19_s20 = int_to_ptr.vmem [resolvable:$true] %s18_s20 }
   0xf   :  { %p158_p4 = scmp.lt.u32.totalorder %s154_s23, %s267_s1 }
  0x11   :  { %p160_p5 = pnand %p158_p4, %p155_p3 }
  0x13   :  { %163 = shalt.err (!%p160_p5)
}
  0x14   :  { %s164_s0 = scalar_lea.vmem %s19_s20, 256  ;;  %p169_p7 = scmp.lt.s32.totalorder %s19_s20, %s19_s20 }
  0x15   :  { %p165_p6 = scmp.ne.s32.totalorder %s19_s20, %s164_s0  ;;  %p170_p8 = scmp.lt.s32.totalorder %s164_s0, %s164_s0 }
  0x17   :  { %p171_p9 = por %p170_p8, %p169_p7 }
  0x19   :  { %p172_p10 = pnand %p171_p9, %p165_p6 }
  0x1b   :  { %175 = shalt.err (!%p172_p10)
}
  0x1c   :  { %s206_s28 = smov 128   ;;  %s207_s29 = smov 8  }
  0x1d   :  { %24 = dma.hbm_to_vmem [thread:$0]  %s267_s1, 256, %s19_s20, [#allocation5], %s206_s28, %s206_s28, %s207_s29  }
  0x1e   :  { %200 = dma.done.wait [#allocation5], 256  }
  0x1f   :  { %201 = vsyncadd [#allocation5], 4294967040  ;;  %s34_s4 = sld [smem:[#allocation3]]  ;;  %s114_s5 = sld [smem:[#allocation3 + $0x4]]  ;;  %v28_v0 = vld [vmem:[#allocation4] sm:$0xff]  ;;  %v30_v1 = vld [vmem:[#allocation4 + $0x8] sm:$0xff] }
  0x20   :  { %s115_s6 = sld [smem:[#allocation3 + $0x8]]  ;;  %s117_s7 = sld [smem:[#allocation3 + $0x1]] }
  0x21   :  { %s118_s8 = sld [smem:[#allocation3 + $0x5]]  ;;  %s248_s9 = sld [smem:[#allocation3 + $0x9]] }
  0x22   :  { %s121_s10 = sld [smem:[#allocation3 + $0x2]]  ;;  %s122_s11 = sld [smem:[#allocation3 + $0x6]] }
  0x23   :  { %s250_s12 = sld [smem:[#allocation3 + $0xa]]  ;;  %s125_s13 = sld [smem:[#allocation3 + $0x3]] }
  0x24   :  { %s126_s1 = sld [smem:[#allocation3 + $0x7]]  ;;  %s127_s14 = sld [smem:[#allocation3 + $0xb]] }
  0x25   :  { %v35_v2 = vstv %s34_s4  ;;  %v38_v4 = vstv %s114_s5  ;;  %s116_s15 = sld [smem:[#allocation3 + $0xc]]  ;;  %s113_s16 = sld [smem:[#allocation3 + $0x10]] }
  0x26   :  { %v36_v3 = vmul.f32 %v35_v2, %v28_v0  ;;  %v39_v5 = vmul.f32 %v38_v4, %v30_v1  ;;  %v50_v6 = vstv %s117_s7  ;;  %v42_v7 = vstv %s115_s6  ;;  %s120_s17 = sld [smem:[#allocation3 + $0xd]]  ;;  %s124_s18 = sld [smem:[#allocation3 + $0xe]] }
  0x27   :  { %v51_v8 = vmul.f32 %v50_v6, %v28_v0  ;;  %v53_v9 = vstv %s118_s8  ;;  %v57_v13 = vstv %s248_s9  ;;  %s128_s19 = sld [smem:[#allocation3 + $0xf]]  ;;  %s208_s20 = smov [#allocation7]  }
  0x28   :  { %v40_v10 = vadd.f32 %v39_v5, %v36_v3  ;;  %v54_v11 = vmul.f32 %v53_v9, %v30_v1  ;;  %v65_v12 = vstv %s121_s10  ;;  %v68_v15 = vstv %s122_s11  ;;  %s104_s21 = sshll.u32 %s208_s20, 4  ;;  %s105_s21 = int_to_ptr.vmem [resolvable:$true] %s104_s21 }
  0x29   :  { %v66_v14 = vmul.f32 %v65_v12, %v28_v0  ;;  %v69_v18 = vmul.f32 %v68_v15, %v30_v1  ;;  %v72_v19 = vstv %s250_s12  ;;  %v80_v20 = vstv %s125_s13  ;;  %s176_s22 = scalar_lea.vmem %s105_s21, 128  ;;  %p181_p12 = scmp.lt.s32.totalorder %s105_s21, %s105_s21 }
  0x2a   :  { %v43_v16 = vadd.f32 %v42_v7, %v40_v10  ;;  %v55_v17 = vadd.f32 %v54_v11, %v51_v8  ;;  %v83_v21 = vstv %s126_s1  ;;  %v81_v24 = vmul.f32 %v80_v20, %v28_v0  ;;  %p177_p11 = scmp.ne.s32.totalorder %s105_s21, %s176_s22  ;;  %p182_p13 = scmp.lt.s32.totalorder %s176_s22, %s176_s22 }
  0x2b   :  { %v70_v23 = vadd.f32 %v69_v18, %v66_v14  ;;  %v84_v25 = vmul.f32 %v83_v21, %v30_v1  ;;  %v87_v27 = vstv %s127_s14  ;;  %v46_v30 = vstv %s116_s15 }
  0x2c   :  { %134 = vtanh.f32 %v43_v16  ;;  %v58_v22 = vadd.f32 %v57_v13, %v55_v17  ;;  %v32_v32 = vstv %s113_s16  ;;  %v61_v33 = vstv %s120_s17  ;;  %p183_p0 = por %p182_p13, %p181_p12 }
  0x2d   :  { %v73_v26 = vadd.f32 %v72_v19, %v70_v23  ;;  %v85_v28 = vadd.f32 %v84_v25, %v81_v24  ;;  %v76_v36 = vstv %s124_s18  ;;  %v91_v42 = vstv %s128_s19 }
  0x2e   :  { %136 = vtanh.f32 %v58_v22  ;;  %p184_p1 = pnand %p183_p0, %p177_p11 }
  0x2f   :  { %138 = vtanh.f32 %v73_v26  ;;  %v88_v29 = vadd.f32 %v87_v27, %v85_v28 }
  0x31   :  { %140 = vtanh.f32 %v88_v29 }
  0x36   :  { %v135_v31 = vpop.eup %134 }
  0x37   :  { %v47_v34 = vmul.f32 %v135_v31, %v46_v30 }
  0x38   :  { %v137_v35 = vpop.eup %136 }
  0x39   :  { %v48_v37 = vadd.f32 %v47_v34, %v32_v32  ;;  %v62_v38 = vmul.f32 %v137_v35, %v61_v33  ;;  %v139_v39 = vpop.eup %138 }
  0x3a   :  { %v77_v41 = vmul.f32 %v139_v39, %v76_v36 }
  0x3b   :  { %v63_v40 = vadd.f32 %v62_v38, %v48_v37  ;;  %v141_v43 = vpop.eup %140 }
  0x3c   :  { %v92_v45 = vmul.f32 %v141_v43, %v91_v42 }
  0x3d   :  { %v78_v44 = vadd.f32 %v77_v41, %v63_v40 }
  0x3f   :  { %v93_v46 = vadd.f32 %v92_v45, %v78_v44 }
  0x41   :  { %142 = vtanh.f32 %v93_v46 }
  0x4b   :  { %v143_v47 = vpop.eup %142 }
  0x4c   :  { %v95_v48 = vmul.f32 0.5, %v143_v47 }
  0x4e   :  { %v96_v49 = vadd.f32 0.5, %v95_v48 }
  0x50   :  { %97 = vst [vmem:[#allocation7] sm:$0xff] %v96_v49 }
  0x51   :  { %187 = shalt.err (!%p184_p1)
}
  0x52   :  { %s188_s25 = scalar_lea.hbm %s268_s2, 128 }
  0x53   :  { %p189_p2 = scmp.ne.s32.totalorder %s268_s2, %s188_s25  ;;  %p192_p3 = scmp.lt.u32.totalorder %s188_s25, %s268_s2 }
  0x55   :  { %p194_p4 = pnand %p192_p3, %p189_p2 }
  0x57   :  { %197 = shalt.err (!%p194_p4)
}
  0x58   :  { %107 = dma.vmem_to_hbm [thread:$0]  %s105_s21, 128, %s268_s2, [#allocation6]  }
  0x59   :  { %202 = dma.done.wait [#allocation6], 128  }
  0x5a   :  { %203 = vsyncadd [#allocation6], 4294967168 }
  0x5b   :  { %111 = vsyncpa [#allocation5], 1 }
  0x5c   :  { %112 = vsyncpa [#allocation6], 1 }

</bundles_post_ra>
